<compile_context>
chip_gen: v7x
topology: tpu7x:2x2x1
jax: 0.10.0
libtpu: 0.0.40
codegen_flags: <defaults>
</compile_context>

<pallas_src>
import math

import jax
import jax.numpy as jnp
from jax.experimental import pallas as pl
from jax.experimental.pallas import tpu as pltpu


_LANE = 128             # lane width: output / tiled-K last-dim granularity
_SUBLANE_32BIT = 8      # f32 sublane rows; sub-32-bit dtypes pack more rows
_MAX_TILE_M = 4096      # soft cap on auto row tiles (2048-4096 sweet spot)
_MIN_M_STEPS = 4        # keep >= 4 row tiles when batch permits (v7x: 2 TCs)
_DEFAULT_TILE_N = 512   # N tile used only when the weight must be tiled
_MAX_TILE_K = 2048      # starting K tile when the weight must be K-tiled


def _round_up(x, m):
    return ((x + m - 1) // m) * m


def _vmem_budget_and_limit():
    """Generation-aware VMEM sizing.

    Plan tiles against ~70% of physical per-core VMEM (64 MiB on v7x,
    128 MiB on v5e/v6e) and raise the Mosaic scoped-vmem limit to ~85% so
    there is headroom for internal scratch / semaphores.  The query is
    config-only; on failure (older jax / off-TPU tracing) fall back to the
    smallest generation (v7x, 64 MiB), which is safe on every chip.
    """
    phys = 64 * 1024 * 1024
    try:
        phys = int(pltpu.get_tpu_info().vmem_capacity_bytes)
    except Exception:  # config query only -- conservative fallback, not a retry
        pass
    return int(phys * 0.70), int(phys * 0.85)


def _resident_spec(block_shape, index_map):
    """BlockSpec for a grid-invariant operand: request a single VMEM buffer.

    The block index never changes, so the second pipeline buffer would only
    waste VMEM.  Only a construction-time TypeError (older jax without
    pipeline_mode / Buffered) is caught -- nothing around pallas_call.
    """
    if hasattr(pl, "Buffered"):
        try:
            return pl.BlockSpec(block_shape, index_map,
                                pipeline_mode=pl.Buffered(1))
        except TypeError:
            pass
    return pl.BlockSpec(block_shape, index_map)


def _sine_kernel(x_ref, wt_ref, b_ref, o_ref):
    # omega_0 is already folded into wt / b:  y = sin(x @ (omega*W.T) + omega*b)
    acc = jnp.dot(x_ref[...], wt_ref[...], preferred_element_type=jnp.float32)
    o_ref[...] = jnp.sin(acc + b_ref[...]).astype(o_ref.dtype)


def _sine_kernel_kacc(x_ref, wt_ref, b_ref, o_ref, acc_ref):
    # K-tiled variant: accumulate partial products in an f32 VMEM scratch,
    # apply bias + sine on the last K step only.
    k = pl.program_id(2)

    @pl.when(k == 0)
    def _():
        acc_ref[...] = jnp.zeros_like(acc_ref)

    acc_ref[...] += jnp.dot(x_ref[...], wt_ref[...],
                            preferred_element_type=jnp.float32)

    @pl.when(k == pl.num_programs(2) - 1)
    def _():
        o_ref[...] = jnp.sin(acc_ref[...] + b_ref[...]).astype(o_ref.dtype)


def sine_layer_forward(x, weight, bias, omega_0=30.0, *,
                       io_dtype=jnp.bfloat16,
                       tile_m=None, tile_n=None, tile_k=None):
    """SIREN SineLayer forward: sin(omega_0 * (x @ W.T + b)).

    x:      (..., in_features)
    weight: (out_features, in_features)
    bias:   (out_features,)
    io_dtype: dtype used for x / W / output HBM traffic and MXU inputs.
        Default bf16 (~2x less HBM traffic on a memory-bound op, native MXU);
        accumulation, bias add and sine are always f32.  Pass
        io_dtype=jnp.float32 (or None to inherit x.dtype) for exact f32
        semantics.  Feed bf16 activations to make the wrapper-side cast free.
    tile_m / tile_n / tile_k: optional tiling overrides (tuning / testing).
    """
    *lead, in_features = x.shape
    out_features = weight.shape[0]
    assert weight.shape == (out_features, in_features)
    assert bias.shape == (out_features,)

    x2 = x.reshape(-1, in_features)
    batch = x2.shape[0]

    io_dtype = jnp.dtype(io_dtype) if io_dtype is not None else jnp.dtype(x.dtype)
    itemsize = io_dtype.itemsize
    x_b = w_b = o_b = itemsize

    vmem_budget, vmem_limit = _vmem_budget_and_limit()

    # Fold omega_0 into W / b once in f32 (O(K*N)); bias stays f32.
    wt = weight.astype(jnp.float32).T * jnp.float32(omega_0)
    b2 = (bias.astype(jnp.float32) * jnp.float32(omega_0)).reshape(1, out_features)

    # Lane-dense output columns; sublane-dense K (fixes the first-layer K=2/3
    # case where an unpadded K starves the MXU and wastes vregs / VMEM).
    n_pad = _round_up(out_features, _LANE)
    k_pad = _round_up(in_features, _SUBLANE_32BIT)

    # ---- weight tiling (N first, then K) under half the VMEM budget --------
    weight_budget = vmem_budget // 2   # leave >= half of VMEM for x / out / acc
    if tile_n is None:
        tile_n = (n_pad if 2 * k_pad * n_pad * w_b <= weight_budget
                  else min(n_pad, _DEFAULT_TILE_N))
    tile_n = min(_round_up(int(tile_n), _LANE), n_pad)
    n_pad = _round_up(n_pad, tile_n)

    if tile_k is None:
        if 2 * k_pad * tile_n * w_b <= weight_budget:
            tile_k = k_pad
        else:
            tile_k = _MAX_TILE_K
            while tile_k > _LANE and 2 * tile_k * tile_n * w_b > weight_budget:
                tile_k //= 2
    tile_k = int(tile_k)
    if tile_k < k_pad:
        # A tiled K is the lane axis of the x block -> must be a multiple of 128.
        tile_k = max(_LANE, _round_up(tile_k, _LANE))
        k_pad = _round_up(k_pad, tile_k)
    if tile_k >= k_pad:
        tile_k = k_pad

    gn = n_pad // tile_n
    gk = k_pad // tile_k
    single_buffer_w = (gn == 1 and gk == 1)   # weight / bias grid-invariant

    # ---- row tiling under the remaining VMEM budget -------------------------
    # Sub-32-bit dtypes pack rows along sublanes (bf16: 2 rows / sublane), so
    # round row tiles to the native packing to keep stores unmasked.
    sublane_m = _SUBLANE_32BIT * max(1, 4 // itemsize)
    w_tile_bytes = tile_k * tile_n * w_b + tile_n * 4        # + f32 bias tile
    per_row = 2 * (tile_k * x_b + tile_n * o_b)              # double-buffered x / out
    if gk > 1:
        per_row += tile_n * 4                                # f32 accumulator scratch
    avail = vmem_budget - 2 * w_tile_bytes
    if tile_m is None:
        tile_m = min(_MAX_TILE_M, max(sublane_m, avail // max(per_row, 1)))
        # Keep >= _MIN_M_STEPS row tiles when the batch permits so the
        # "parallel" row axis splits across both v7x TensorCores and the DMA
        # pipeline has steps to overlap (v5e/v6e only need a few steps).
        if batch >= _MIN_M_STEPS * sublane_m:
            tile_m = min(tile_m,
                         _round_up((batch + _MIN_M_STEPS - 1) // _MIN_M_STEPS,
                                   sublane_m))
    tile_m = _round_up(max(int(tile_m), 1), sublane_m)
    tile_m = min(tile_m, _round_up(batch, sublane_m))

    m_pad = _round_up(batch, tile_m)
    gm = m_pad // tile_m

    # ---- pad operands so every grid step sees a full, dense tile ------------
    if k_pad != in_features:
        x2 = jnp.pad(x2, ((0, 0), (0, k_pad - in_features)))
        wt = jnp.pad(wt, ((0, k_pad - in_features), (0, 0)))
    if n_pad != out_features:
        wt = jnp.pad(wt, ((0, 0), (0, n_pad - out_features)))
        b2 = jnp.pad(b2, ((0, 0), (0, n_pad - out_features)))
    if m_pad != batch:
        x2 = jnp.pad(x2, ((0, m_pad - batch), (0, 0)))
    x2 = x2.astype(io_dtype)
    wt = wt.astype(io_dtype)

    cost = pl.CostEstimate(
        flops=2 * m_pad * k_pad * n_pad,
        transcendentals=m_pad * n_pad,
        bytes_accessed=(m_pad * k_pad * x_b + k_pad * n_pad * w_b
                        + 4 * n_pad + m_pad * n_pad * o_b),
    )

    x_spec = pl.BlockSpec((tile_m, tile_k), lambda i, j, k: (i, k))
    o_spec = pl.BlockSpec((tile_m, tile_n), lambda i, j, k: (i, j))
    if single_buffer_w:
        w_spec = _resident_spec((tile_k, tile_n), lambda i, j, k: (k, j))
        b_spec = _resident_spec((1, tile_n), lambda i, j, k: (0, j))
    else:
        w_spec = pl.BlockSpec((tile_k, tile_n), lambda i, j, k: (k, j))
        b_spec = pl.BlockSpec((1, tile_n), lambda i, j, k: (0, j))

    kernel = _sine_kernel if gk == 1 else _sine_kernel_kacc
    scratch = [] if gk == 1 else [pltpu.VMEM((tile_m, tile_n), jnp.float32)]

    out = pl.pallas_call(
        kernel,
        out_shape=jax.ShapeDtypeStruct((m_pad, n_pad), io_dtype),
        grid_spec=pltpu.PrefetchScalarGridSpec(
            num_scalar_prefetch=0,
            grid=(gm, gn, gk),
            in_specs=[x_spec, w_spec, b_spec],
            out_specs=o_spec,
            scratch_shapes=scratch,
        ),
        compiler_params=pltpu.CompilerParams(
            dimension_semantics=("parallel", "parallel", "arbitrary"),
            vmem_limit_bytes=vmem_limit,
        ),
        cost_estimate=cost,
    )(x2, wt, b2)

    out = out[:batch, :out_features]
    return out.reshape(*lead, out_features)


def init_sine_layer_params(key, in_features, out_features, is_first=False,
                           omega_0=30.0):
    """Deterministic SIREN initialization (matches SineLayer.init_weights)."""
    kw, kb = jax.random.split(key)
    if is_first:
        bound_w = 1.0 / in_features
    else:
        bound_w = math.sqrt(6.0 / in_features) / omega_0
    weight = jax.random.uniform(kw, (out_features, in_features), jnp.float32,
                                minval=-bound_w, maxval=bound_w)
    # nn.Linear default bias init: U(-1/sqrt(in_features), 1/sqrt(in_features))
    bound_b = 1.0 / math.sqrt(in_features)
    bias = jax.random.uniform(kb, (out_features,), jnp.float32,
                              minval=-bound_b, maxval=bound_b)
    return weight, bias


def _reference(x, weight, bias, omega_0):
    return jnp.sin(omega_0 * (jnp.einsum("...k,nk->...n", x, weight) + bias))


if __name__ == "__main__":
    key = jax.random.PRNGKey(0)
    k_x, k_p1, k_p2, k_p3 = jax.random.split(key, 4)
    omega_0 = 30.0

    # 1) Hidden-layer shapes, default bf16 I/O (inference-style, approximate).
    #    Exercises row padding (20 -> 32 rows) and lane padding (48 -> 128).
    x1 = jax.random.normal(k_x, (4, 5, 32), jnp.float32)
    w1, b1 = init_sine_layer_params(k_p1, 32, 48, is_first=True, omega_0=omega_0)
    y1 = sine_layer_forward(x1, w1, b1, omega_0=omega_0)          # bf16 default
    jax.block_until_ready(y1)
    ref1 = _reference(x1, w1, b1, omega_0)
    assert y1.shape == ref1.shape and y1.dtype == jnp.bfloat16
    assert float(jnp.max(jnp.abs(y1.astype(jnp.float32) - ref1))) < 1e-1

    # 2) Same shapes, exact f32 path.
    y2 = sine_layer_forward(x1, w1, b1, omega_0=omega_0, io_dtype=jnp.float32)
    jax.block_until_ready(y2)
    assert y2.dtype == jnp.float32
    assert jnp.allclose(y2, ref1, atol=1e-5, rtol=1e-5)

    # 3) SIREN first layer with tiny K (coordinate inputs): K padded 3 -> 8.
    x3 = jax.random.normal(k_x, (7, 3), jnp.float32)
    w3, b3 = init_sine_layer_params(k_p2, 3, 64, is_first=True, omega_0=omega_0)
    y3 = sine_layer_forward(x3, w3, b3, omega_0=omega_0, io_dtype=jnp.float32)
    jax.block_until_ready(y3)
    assert jnp.allclose(y3, _reference(x3, w3, b3, omega_0), atol=1e-5, rtol=1e-5)

    # 4) Forced N/K tiling (small tiles) to exercise the f32-accumulator path
    #    used when a large weight cannot stay fully VMEM-resident.
    x4 = jax.random.normal(k_x, (64, 256), jnp.float32)
    w4, b4 = init_sine_layer_params(k_p3, 256, 384, is_first=False, omega_0=omega_0)
    y4 = sine_layer_forward(x4, w4, b4, omega_0=omega_0, io_dtype=jnp.float32,
                            tile_n=128, tile_k=128)
    jax.block_until_ready(y4)
    assert jnp.allclose(y4, _reference(x4, w4, b4, omega_0), atol=5e-4, rtol=5e-4)

    print("KERNEL_OK")
</pallas_src>

<mosaic_0001>
module attributes {stable_mosaic.version = 11 : i64} {
  func.func @_sine_kernel(%arg0: i32, %arg1: i32, %arg2: i32, %arg3: memref<32x32xbf16, #tpu.memory_space<vmem>>, %arg4: memref<32x128xbf16, #tpu.memory_space<vmem>>, %arg5: memref<1x128xf32, #tpu.memory_space<vmem>>, %arg6: memref<32x128xbf16, #tpu.memory_space<vmem>>) attributes {dimension_semantics = [#tpu.dimension_semantics<parallel>, #tpu.dimension_semantics<parallel>, #tpu.dimension_semantics<arbitrary>], iteration_bounds = array<i64: 1, 1, 1>, scalar_prefetch = 0 : i64, scratch_operands = 0 : i64, tpu.core_type = #tpu.core_type<tc>, window_params = [{transform_indices = @transform_0, window_bounds = array<i64: 32, 32>}, {pipeline_mode = #tpu.pipeline_mode<synchronous>, transform_indices = @transform_1, window_bounds = array<i64: 32, 128>}, {pipeline_mode = #tpu.pipeline_mode<synchronous>, transform_indices = @transform_2, window_bounds = array<i64: 1, 128>}, {transform_indices = @transform_3, window_bounds = array<i64: 32, 128>}]} {
    %c0 = arith.constant 0 : index
    %c0_0 = arith.constant 0 : index
    %0 = vector.load %arg3[%c0, %c0_0] : memref<32x32xbf16, #tpu.memory_space<vmem>>, vector<32x32xbf16>
    %c0_1 = arith.constant 0 : index
    %c0_2 = arith.constant 0 : index
    %1 = vector.load %arg4[%c0_1, %c0_2] : memref<32x128xbf16, #tpu.memory_space<vmem>>, vector<32x128xbf16>
    %cst = arith.constant dense<0.000000e+00> : vector<32x128xf32>
    %2 = tpu.matmul %0, %1, %cst {dimension_numbers = #tpu.dot_dimension_numbers<[1], [0], [0], [1], [0, 0, 1, 1], [], []>} : vector<32x32xbf16>, vector<32x128xbf16>, vector<32x128xf32> -> vector<32x128xf32>
    %c0_3 = arith.constant 0 : index
    %c0_4 = arith.constant 0 : index
    %3 = vector.load %arg5[%c0_3, %c0_4] : memref<1x128xf32, #tpu.memory_space<vmem>>, vector<1x128xf32>
    %4 = vector.broadcast %3 : vector<1x128xf32> to vector<32x128xf32>
    %5 = arith.addf %2, %4 : vector<32x128xf32>
    %6 = math.sin %5 : vector<32x128xf32>
    %7 = arith.truncf %6 : vector<32x128xf32> to vector<32x128xbf16>
    %c0_5 = arith.constant 0 : index
    %c0_6 = arith.constant 0 : index
    %8 = vector.load %arg6[%c0_5, %c0_6] : memref<32x128xbf16, #tpu.memory_space<vmem>>, vector<32x128xbf16>
    tpu.vector_store %arg6[%c0_5, %c0_6], %7 {strides = array<i32>} : memref<32x128xbf16, #tpu.memory_space<vmem>>, vector<32x128xbf16>,
    return
  }
  func.func @transform_0(%arg0: i32, %arg1: i32, %arg2: i32) -> (i32, i32) {
    %c0_i32 = arith.constant 0 : i32
    return %arg0, %arg2 : i32, i32
  }
  func.func @transform_1(%arg0: i32, %arg1: i32, %arg2: i32) -> (i32, i32) {
    %c0_i32 = arith.constant 0 : i32
    return %arg2, %arg1 : i32, i32
  }
  func.func @transform_2(%arg0: i32, %arg1: i32, %arg2: i32) -> (i32, i32) {
    %c0_i32 = arith.constant 0 : i32
    %c0_i32_0 = arith.constant 0 : i32
    return %c0_i32, %arg1 : i32, i32
  }
  func.func @transform_3(%arg0: i32, %arg1: i32, %arg2: i32) -> (i32, i32) {
    %c0_i32 = arith.constant 0 : i32
    return %arg0, %arg1 : i32, i32
  }
}

</mosaic_0001>

<bundles_post_ra>
// kernel: tpu_custom_call.1
= control target key start
LH: loop header
LB: loop body
LE: loop exit
PB: predicated region body
PF: predicated region fallthrough
CT: control target
= control target key end

     0   :  { %8 = vsyncpa [#allocation3], 0  ;;  %s1126_s0 = inlined_call_operand.hbm [shape: bf16[32,32], index: 0, kind: input, shape index: {}]   ;;  %s1127_s1 = inlined_call_operand.hbm [shape: bf16[32,128], index: 1, kind: input, shape index: {}]   ;;  %s1128_s2 = inlined_call_operand.vmem [shape: f32[1,128], index: 2, kind: input, shape index: {}]   ;;  %s1129_s3 = inlined_call_operand.hbm [shape: bf16[32,128], index: 3, kind: output, shape index: {}]  }
   0x1   :  { %9 = vsyncpa [#allocation6], 0 }
   0x2   :  { %10 = vsyncpa [#allocation4], 0  ;;  %s764_s12 = smov [#allocation2]   ;;  %s692_s16 = scalar_lea.hbm %s1126_s0, 256 }
   0x3   :  { %s16_s13 = sshll.u32 %s764_s12, 4  ;;  %p693_p0 = scmp.ne.s32.totalorder %s1126_s0, %s692_s16  ;;  %s17_s13 = int_to_ptr.vmem [resolvable:$true] %s16_s13 }
   0x4   :  { %p696_p1 = scmp.lt.u32.totalorder %s692_s16, %s1126_s0 }
   0x6   :  { %p698_p2 = pnand %p696_p1, %p693_p0 }
   0x8   :  { %701 = shalt.err (!%p698_p2)
}
   0x9   :  { %s702_s21 = scalar_lea.vmem %s17_s13, 256  ;;  %p707_p4 = scmp.lt.s32.totalorder %s17_s13, %s17_s13 }
   0xa   :  { %p703_p3 = scmp.ne.s32.totalorder %s17_s13, %s702_s21  ;;  %p708_p5 = scmp.lt.s32.totalorder %s702_s21, %s702_s21 }
   0xc   :  { %p709_p6 = por %p708_p5, %p707_p4 }
   0xe   :  { %p710_p7 = pnand %p709_p6, %p703_p3 }
  0x10   :  { %713 = shalt.err (!%p710_p7)
}
  0x11   :  { %s765_s22 = smov 64   ;;  %s766_s23 = smov 4  }
  0x12   :  { %22 = dma.hbm_to_vmem [thread:$0]  %s1126_s0, 256, %s17_s13, [#allocation3], %s765_s22, %s765_s22, %s766_s23  }
  0x13   :  { %s767_s26 = smov [#allocation5]   ;;  %s714_s30 = scalar_lea.hbm %s1127_s1, 256 }
  0x14   :  { %s28_s27 = sshll.u32 %s767_s26, 4  ;;  %p715_p8 = scmp.ne.s32.totalorder %s1127_s1, %s714_s30  ;;  %s29_s27 = int_to_ptr.vmem [resolvable:$true] %s28_s27 }
  0x15   :  { %p718_p9 = scmp.lt.u32.totalorder %s714_s30, %s1127_s1 }
  0x17   :  { %p720_p10 = pnand %p718_p9, %p715_p8 }
  0x19   :  { %723 = shalt.err (!%p720_p10)
}
  0x1a   :  { %s724_s8 = scalar_lea.vmem %s29_s27, 256  ;;  %p729_p12 = scmp.lt.s32.totalorder %s29_s27, %s29_s27 }
  0x1b   :  { %p725_p11 = scmp.ne.s32.totalorder %s29_s27, %s724_s8  ;;  %p730_p13 = scmp.lt.s32.totalorder %s724_s8, %s724_s8 }
  0x1d   :  { %p731_p0 = por %p730_p13, %p729_p12 }
  0x1f   :  { %p732_p1 = pnand %p731_p0, %p725_p11 }
  0x21   :  { %735 = shalt.err (!%p732_p1)
}
  0x22   :  { %34 = dma.hbm_to_vmem [thread:$0]  %s1127_s1, 256, %s29_s27, [#allocation6], %s765_s22, %s765_s22, %s766_s23  }
  0x23   :  { %758 = dma.done.wait [#allocation3], 256  }
  0x24   :  { %759 = vsyncadd [#allocation3], 4294967040 }
  0x25   :  { %760 = dma.done.wait [#allocation6], 256  }
  0x26   :  { %761 = vsyncadd [#allocation6], 4294967040  ;;  %v672_v0 = vld [vmem:[#allocation5] sm:$0xff]   ;;  %v673_v1 = vld [vmem:[#allocation5 + $0x8] sm:$0xff]   ;;  %vm81_vm0 = vcmask 261120   ;;  %s774_s1 = smov [#allocation7]  }
  0x27   :  { %637 = vmatprep.subr.bf16.mxu0 %v672_v0  ;;  %v674_v2 = vld [vmem:[#allocation2] sm:$0xff]   ;;  %v675_v3 = vld [vmem:[#allocation2 + $0x8] sm:$0xff]   ;;  %v768_v42 = vmov 683565275   ;;  %v769_v44 = vmov 2475754826  }
  0x28   :  { %638 = vmatpush3.bf16.msra.mxu0 %v672_v0  ;;  %641 = vmatprep.mubr.msk.bf16.mxu0 %vm81_vm0, %v674_v2  ;;  %v591_v4 = vld [vmem:[%s1128_s2] ss:$0 sm:$0xff]  ;;  %v770_v47 = vmov 2131351028   ;;  %v771_v49 = vmov 2102212464  }
  0x29   :  { %639 = vmatprep.subr.bf16.mxu0 %v673_v1  ;;  %v772_v51 = vmov 920167782   ;;  %v773_v58 = vmov 1326507024   ;;  %s578_s2 = sshll.u32 %s774_s1, 4  ;;  %s579_s2 = int_to_ptr.vmem [resolvable:$true] %s578_s2 }
  0x2a   :  { %s736_s12 = scalar_lea.vmem %s579_s2, 256  ;;  %p741_p3 = scmp.lt.s32.totalorder %s579_s2, %s579_s2 }
  0x2b   :  { %p737_p2 = scmp.ne.s32.totalorder %s579_s2, %s736_s12  ;;  %p742_p4 = scmp.lt.s32.totalorder %s736_s12, %s736_s12 }
  0x2c   :  { %640 = vmatpush3.bf16.msra.mxu0 %v673_v1 }
  0x2d   :  { %p743_p5 = por %p742_p4, %p741_p3 }
  0x2f   :  { %642 = vmatmul.mubr.msk.bf16.vlgmr.msra.gmra.mrb[0].mxu0 %vm81_vm0, %v675_v3  ;;  %p744_p6 = pnand %p743_p5, %p737_p2 }
 0x102   :  { %v643_v5 = vpop.f32.mrb[0].mxu0 }
 0x103   :  { %v828_v6 = vadd.f32 %v643_v5, %v591_v4  ;;  %v122_v7 = vpop.f32.mrb[1].mxu0 }
 0x104   :  { %v830_v8 = vadd.f32 %v591_v4, %v122_v7  ;;  %v644_v9 = vpop.f32.mrb[2].mxu0 }
 0x105   :  { %v345_v10 = vand.u32 2147483647, %v828_v6  ;;  %v348_v11 = vand.u32 2139095040, %v828_v6  ;;  %v834_v12 = vadd.f32 %v644_v9, %v591_v4  ;;  %v125_v13 = vpop.f32.mrb[3].mxu0 }
 0x106   :  { %v137_v14 = vand.u32 2147483647, %v830_v8  ;;  %v140_v15 = vand.u32 2139095040, %v830_v8  ;;  %v844_v30 = vadd.f32 %v591_v4, %v125_v13 }
 0x107   :  { %v349_v16 = vshrl.u32 %v348_v11, 23  ;;  %v352_v17 = vand.u32 8388607, %v345_v10  ;;  %v452_v20 = vand.u32 2139095040, %v834_v12  ;;  %v449_v26 = vand.u32 2147483647, %v834_v12 }
 0x108   :  { %v141_v18 = vshrl.u32 %v140_v15, 23  ;;  %v144_v19 = vand.u32 8388607, %v137_v14  ;;  %v244_v40 = vand.u32 2139095040, %v844_v30 }
 0x109   :  { %v606_v21 = vadd.s32 4294967169, %v349_v16  ;;  %v353_v22 = vor.u32 8388608, %v352_v17  ;;  %v453_v24 = vshrl.u32 %v452_v20, 23  ;;  %v850_v36 = vand.u32 8388607, %v449_v26 }
 0x10a   :  { %v598_v23 = vadd.s32 4294967169, %v141_v18  ;;  %v145_v27 = vor.u32 8388608, %v144_v19 }
 0x10b   :  { %v355_v25 = vadd.s32 1, %v606_v21  ;;  %v610_v29 = vadd.s32 4294967169, %v453_v24  ;;  %v846_v32 = vshll.u32 %v353_v22, 8 }
 0x10c   :  { %v147_v28 = vadd.s32 1, %v598_v23  ;;  %v854_v38 = vshll.u32 %v145_v27, 8 }
 0x10d   :  { %vm356_vm1 = vcmp.gt.s32.totalorder %v355_v25, 0  ;;  %v856_v39 = vadd.s32 1, %v610_v29 }
 0x10e   :  { %v357_v31 = vsel %vm356_vm1, %v355_v25, 0  ;;  %vm148_vm2 = vcmp.gt.s32.totalorder %v147_v28, 0 }
 0x10f   :  { %v358_v33 = vshrl.u32 %v357_v31, 5  ;;  %v359_v34 = vand.u32 31, %v357_v31  ;;  %v149_v35 = vsel %vm148_vm2, %v147_v28, 0  ;;  %vm460_vm7 = vcmp.gt.s32.totalorder %v856_v39, 0 }
 0x110   :  { %v852_v37 = vshrl.u32 %v149_v35, 5  ;;  %v151_v46 = vand.u32 31, %v149_v35 }
 0x111   :  { %v360_v41 = vsub.s32 32, %v359_v34  ;;  %v362_v43 = vshll.u32 %v768_v42, %v359_v34  ;;  %v365_v45 = vshll.u32 %v769_v44, %v359_v34  ;;  %v368_v48 = vshll.u32 %v770_v47, %v359_v34 }
 0x112   :  { %v371_v50 = vshll.u32 %v771_v49, %v359_v34  ;;  %v374_v52 = vshll.u32 %v772_v51, %v359_v34  ;;  %vm377_vm3 = vcmp.lt.s32.totalorder %v358_v33, 1  ;;  %vm378_vm4 = vcmp.lt.s32.totalorder %v358_v33, 2 }
 0x113   :  { %v363_v53 = vshrl.u32 %v769_v44, %v360_v41  ;;  %v366_v54 = vshrl.u32 %v770_v47, %v360_v41  ;;  %v369_v55 = vshrl.u32 %v771_v49, %v360_v41  ;;  %v361_v56 = vshrl.u32 %v768_v42, %v360_v41 }
 0x114   :  { %v372_v57 = vshrl.u32 %v772_v51, %v360_v41  ;;  %v375_v59 = vshrl.u32 %v773_v58, %v360_v41  ;;  %vm379_vm5 = vcmp.lt.s32.totalorder %v358_v33, 3  ;;  %v152_v63 = vsub.s32 32, %v151_v46 }
 0x115   :  { %v364_v60 = vor.u32 %v363_v53, %v362_v43  ;;  %v367_v61 = vor.u32 %v366_v54, %v365_v45  ;;  %v370_v62 = vor.u32 %v369_v55, %v368_v48  ;;  %vm380_vm6 = vcmp.lt.s32.totalorder %v358_v33, 4 }
 0x116   :  { %v373_v0 = vor.u32 %v372_v57, %v371_v50  ;;  %v376_v1 = vor.u32 %v375_v59, %v374_v52  ;;  %v154_v2 = vshll.u32 %v768_v42, %v151_v46  ;;  %v157_v15 = vshll.u32 %v769_v44, %v151_v46 }
 0x117   :  { %v381_v3 = vsel %vm377_vm3, %v361_v56, %v364_v60  ;;  %v382_v4 = vsel %vm380_vm6, %v370_v62, 2102212464  ;;  %v385_v5 = vsel %vm377_vm3, %v364_v60, %v367_v61  ;;  %v389_v7 = vsel %vm377_vm3, %v367_v61, %v370_v62 }
 0x118   :  { %v383_v9 = vsel %vm379_vm5, %v367_v61, %v382_v4  ;;  %v386_v11 = vsel %vm380_vm6, %v373_v0, 920167782  ;;  %v390_v13 = vsel %vm380_vm6, %v376_v1, 1326507024  ;;  %v153_v18 = vshrl.u32 %v768_v42, %v152_v63 }
 0x119   :  { %v387_v16 = vsel %vm379_vm5, %v370_v62, %v386_v11  ;;  %v391_v17 = vsel %vm379_vm5, %v373_v0, %v390_v13  ;;  %v155_v19 = vshrl.u32 %v769_v44, %v152_v63  ;;  %v384_v20 = vsel %vm378_vm4, %v381_v3, %v383_v9 }
 0x11a   :  { %v388_v21 = vsel %vm378_vm4, %v385_v5, %v387_v16  ;;  %v392_v22 = vsel %vm378_vm4, %v389_v7, %v391_v17  ;;  %v158_v23 = vshrl.u32 %v770_v47, %v152_v63  ;;  %v160_v34 = vshll.u32 %v770_v47, %v151_v46 }
 0x11b   :  { %v886_v24 = vmul.u32.u64.low %v846_v32, %v392_v22  ;;  %v887_v25 = vmul.u32.u64.high %v846_v32, %v392_v22, %v886_v24  ;;  %v890_v27 = vmul.u32.u64.low %v846_v32, %v388_v21  ;;  %v891_v28 = vmul.u32.u64.high %v846_v32, %v388_v21, %v890_v27 }
 0x11c   :  { %v156_v29 = vor.u32 %v155_v19, %v154_v2  ;;  %v159_v31 = vor.u32 %v158_v23, %v157_v15  ;;  %v161_v35 = vshrl.u32 %v771_v49, %v152_v63  ;;  %v400_v33 = vmul.u32 %v846_v32, %v384_v20 }
 0x11d   :  { %v163_v41 = vshll.u32 %v771_v49, %v151_v46  ;;  %v164_v43 = vshrl.u32 %v772_v51, %v152_v63  ;;  %v167_v45 = vshrl.u32 %v773_v58, %v152_v63  ;;  %v166_v50 = vshll.u32 %v772_v51, %v151_v46 }
 0x11e   :  { %v162_v48 = vor.u32 %v161_v35, %v160_v34  ;;  %vm169_vm8 = vcmp.lt.s32.totalorder %v852_v37, 1  ;;  %vm170_vm9 = vcmp.lt.s32.totalorder %v852_v37, 2  ;;  %vm402_vm10 = vc.u32 %v887_v25, %v890_v27 }
 0x11f   :  { %v403_v52 = vadd.s32 1, %v891_v28  ;;  %v165_v53 = vor.u32 %v164_v43, %v163_v41  ;;  %vm171_vm11 = vcmp.lt.s32.totalorder %v852_v37, 3  ;;  %v168_v32 = vor.u32 %v167_v45, %v166_v50 }
 0x120   :  { %vm172_vm12 = vcmp.lt.s32.totalorder %v852_v37, 4  ;;  %v173_v54 = vsel %vm169_vm8, %v153_v18, %v156_v29  ;;  %v177_v55 = vsel %vm169_vm8, %v156_v29, %v159_v31  ;;  %v181_v59 = vsel %vm169_vm8, %v159_v31, %v162_v48 }
 0x121   :  { %v404_v56 = vsel %vm402_vm10, %v403_v52, %v891_v28  ;;  %v174_v46 = vsel %vm172_vm12, %v162_v48, 2102212464  ;;  %v178_v57 = vsel %vm172_vm12, %v165_v53, 920167782  ;;  %v182_v63 = vsel %vm172_vm12, %v168_v32, 1326507024 }
 0x122   :  { %v405_v60 = vadd.s32 %v404_v56, %v400_v33  ;;  %v175_v61 = vsel %vm171_vm11, %v159_v31, %v174_v46  ;;  %v179_v62 = vsel %vm171_vm11, %v162_v48, %v178_v57  ;;  %v183_v1 = vsel %vm171_vm11, %v165_v53, %v182_v63 }
 0x123   :  { %v180_v0 = vsel %vm170_vm9, %v177_v55, %v179_v62  ;;  %v461_v2 = vsel %vm460_vm7, %v856_v39, 0  ;;  %v245_v3 = vshrl.u32 %v244_v40, 23  ;;  %v184_v5 = vsel %vm170_vm9, %v181_v59, %v183_v1 }
 0x124   :  { %v406_v4 = vadd.s32 536870912, %v405_v60  ;;  %v919_v7 = vmul.u32.u64.low %v854_v38, %v180_v0  ;;  %v920_v9 = vmul.u32.u64.high %v854_v38, %v180_v0, %v919_v7  ;;  %v176_v11 = vsel %vm170_vm9, %v173_v54, %v175_v61 }
 0x125   :  { %v926_v13 = vmul.u32.u64.low %v854_v38, %v184_v5  ;;  %v927_v15 = vmul.u32.u64.high %v854_v38, %v184_v5, %v926_v13  ;;  %v929_v39 = vshrl.u32 %v461_v2, 5  ;;  %v463_v40 = vand.u32 31, %v461_v2 }
 0x126   :  { %v931_v16 = vshrl.u32 %v406_v4, 30  ;;  %v457_v17 = vor.u32 8388608, %v850_v36  ;;  %v192_v19 = vmul.u32 %v854_v38, %v176_v11  ;;  %v195_v20 = vadd.s32 1, %v920_v9 }
 0x127   :  { %v464_v21 = vsub.s32 32, %v463_v40  ;;  %vm194_vm13 = vc.u32 %v927_v15, %v919_v7  ;;  %vm481_vm14 = vcmp.lt.s32.totalorder %v929_v39, 1  ;;  %vm482_vm15 = vcmp.lt.s32.totalorder %v929_v39, 2 }
 0x128   :  { %v408_v18 = vshll.u32 %v931_v16, 30  ;;  %v602_v37 = vadd.s32 4294967169, %v245_v3  ;;  %v196_v23 = vsel %vm194_vm13, %v195_v20, %v920_v9  ;;  %v466_v36 = vshll.u32 %v768_v42, %v463_v40 }
 0x129   :  { %v469_v24 = vshll.u32 %v769_v44, %v463_v40  ;;  %v197_v38 = vadd.s32 %v196_v23, %v192_v19  ;;  %v467_v28 = vshrl.u32 %v769_v44, %v464_v21  ;;  %v470_v29 = vshrl.u32 %v770_v47, %v464_v21 }
 0x12a   :  { %v941_v22 = vsub.s32 %v405_v60, %v408_v18  ;;  %v472_v31 = vshll.u32 %v770_v47, %v463_v40  ;;  %v473_v35 = vshrl.u32 %v771_v49, %v464_v21  ;;  %v475_v33 = vshll.u32 %v771_v49, %v463_v40 }
 0x12b   :  { %v476_v41 = vshrl.u32 %v772_v51, %v464_v21  ;;  %v198_v43 = vadd.s32 536870912, %v197_v38  ;;  %v468_v45 = vor.u32 %v467_v28, %v466_v36  ;;  %v471_v48 = vor.u32 %v470_v29, %v469_v24 }
 0x12c   :  { %v411_v34 = vsub.s32 0, %v941_v22  ;;  %v478_v50 = vshll.u32 %v772_v51, %v463_v40  ;;  %v474_v53 = vor.u32 %v473_v35, %v472_v31  ;;  %v479_v54 = vshrl.u32 %v773_v58, %v464_v21 }
 0x12d   :  { %v477_v32 = vor.u32 %v476_v41, %v475_v33  ;;  %v956_v55 = vshrl.u32 %v198_v43, 30  ;;  %vm483_vm0 = vcmp.lt.s32.totalorder %v929_v39, 3  ;;  %vm484_vm1 = vcmp.lt.s32.totalorder %v929_v39, 4 }
 0x12e   :  { %v607_v52 = vmin.u32 %v411_v34, %v941_v22  ;;  %v489_v56 = vsel %vm481_vm14, %v468_v45, %v471_v48  ;;  %v480_v57 = vor.u32 %v479_v54, %v478_v50  ;;  %v486_v59 = vsel %vm484_vm1, %v474_v53, 2102212464 }
 0x12f   :  { %v490_v60 = vsel %vm484_vm1, %v477_v32, 920167782  ;;  %v200_v61 = vshll.u32 %v956_v55, 30  ;;  %v465_v62 = vshrl.u32 %v768_v42, %v464_v21  ;;  %v251_v0 = vadd.s32 1, %v602_v37 }
 0x130   :  { %v413_v46 = vclz %v607_v52  ;;  %v491_v63 = vsel %vm483_vm0, %v474_v53, %v490_v60  ;;  %v493_v3 = vsel %vm481_vm14, %v471_v48, %v474_v53  ;;  %v497_v4 = vshll.u32 %v457_v17, 8 }
 0x131   :  { %v492_v2 = vsel %vm482_vm15, %v489_v56, %v491_v63  ;;  %v974_v5 = vsub.s32 %v197_v38, %v200_v61  ;;  %v485_v9 = vsel %vm481_vm14, %v465_v62, %v468_v45  ;;  %v487_v11 = vsel %vm483_vm0, %v471_v48, %v486_v59 }
 0x132   :  { %v608_v1 = vadd.s32 4294967294, %v413_v46  ;;  %v494_v13 = vsel %vm484_vm1, %v480_v57, 1326507024  ;;  %v984_v18 = vmul.u32.u64.low %v497_v4, %v492_v2  ;;  %v985_v19 = vmul.u32.u64.high %v497_v4, %v492_v2, %v984_v18 }
 0x133   :  { %v495_v40 = vsel %vm483_vm0, %v477_v32, %v494_v13  ;;  %v203_v20 = vsub.s32 0, %v974_v5  ;;  %vm252_vm3 = vcmp.gt.s32.totalorder %v251_v0, 0  ;;  %v488_v38 = vsel %vm482_vm15, %v485_v9, %v487_v11 }
 0x134   :  { %vm609_vm2 = vcmp.lt.s32.totalorder %v608_v1, 0  ;;  %v496_v21 = vsel %vm482_vm15, %v493_v3, %v495_v40  ;;  %v253_v23 = vsel %vm252_vm3, %v251_v0, 0  ;;  %v507_v28 = vadd.s32 1, %v985_v19 }
 0x135   :  { %v416_v17 = vsel %vm609_vm2, 0, %v608_v1  ;;  %v991_v36 = vmul.u32.u64.low %v497_v4, %v496_v21  ;;  %v992_v24 = vmul.u32.u64.high %v497_v4, %v496_v21, %v991_v36  ;;  %v255_v29 = vand.u32 31, %v253_v23 }
 0x136   :  { %v421_v37 = vsub.s32 4294967266, %v416_v17  ;;  %v599_v34 = vmin.u32 %v203_v20, %v974_v5  ;;  %v241_v35 = vand.u32 2147483647, %v844_v30  ;;  %v417_v33 = vsub.s32 32, %v416_v17 }
 0x137   :  { %v504_v41 = vmul.u32 %v497_v4, %v488_v38  ;;  %vm506_vm4 = vc.u32 %v992_v24, %v984_v18  ;;  %v256_v45 = vsub.s32 32, %v255_v29  ;;  %v401_v39 = vadd.s32 %v890_v27, %v887_v25 }
 0x138   :  { %v422_v31 = vadd.s32 127, %v421_v37  ;;  %v508_v43 = vsel %vm506_vm4, %v507_v28, %v985_v19  ;;  %v205_v50 = vclz %v599_v34  ;;  %v248_v53 = vand.u32 8388607, %v241_v35 }
 0x139   :  { %v509_v52 = vadd.s32 %v508_v43, %v504_v41  ;;  %v418_v32 = vshll.u32 %v941_v22, %v416_v17  ;;  %v419_v54 = vshrl.u32 %v401_v39, %v417_v33  ;;  %v254_v46 = vshrl.u32 %v253_v23, 5 }
 0x13a   :  { %v423_v48 = vshll.u32 %v422_v31, 23  ;;  %v258_v57 = vshll.u32 %v768_v42, %v255_v29  ;;  %v259_v59 = vshrl.u32 %v769_v44, %v256_v45  ;;  %v262_v60 = vshrl.u32 %v770_v47, %v256_v45 }
 0x13b   :  { %v510_v56 = vadd.s32 536870912, %v509_v52  ;;  %v265_v61 = vshrl.u32 %v771_v49, %v256_v45  ;;  %v600_v27 = vadd.s32 4294967294, %v205_v50  ;;  %v261_v63 = vshll.u32 %v769_v44, %v255_v29 }
 0x13c   :  { %v424_v25 = vor.u32 4788187, %v423_v48  ;;  %v264_v0 = vshll.u32 %v770_v47, %v255_v29  ;;  %v267_v22 = vshll.u32 %v771_v49, %v255_v29  ;;  %v268_v1 = vshrl.u32 %v772_v51, %v256_v45 }
 0x13d   :  { %v1011_v62 = vshrl.u32 %v510_v56, 30  ;;  %v271_v2 = vshrl.u32 %v773_v58, %v256_v45  ;;  %v420_v3 = vor.u32 %v419_v54, %v418_v32  ;;  %v270_v9 = vshll.u32 %v772_v51, %v255_v29 }
 0x13e   :  { %v260_v11 = vor.u32 %v259_v59, %v258_v57  ;;  %v263_v13 = vor.u32 %v262_v60, %v261_v63  ;;  %v266_v40 = vor.u32 %v265_v61, %v264_v0  ;;  %v269_v19 = vor.u32 %v268_v1, %v267_v22 }
 0x13f   :  { %v512_v4 = vshll.u32 %v1011_v62, 30  ;;  %v249_v20 = vor.u32 8388608, %v248_v53  ;;  %v272_v44 = vor.u32 %v271_v2, %v270_v9  ;;  %vm273_vm5 = vcmp.lt.s32.totalorder %v254_v46, 1 }
 0x140   :  { %v425_v47 = vand.u32 2147483647, %v424_v25  ;;  %vm601_vm6 = vcmp.lt.s32.totalorder %v600_v27, 0  ;;  %vm274_vm7 = vcmp.lt.s32.totalorder %v254_v46, 2  ;;  %vm275_vm8 = vcmp.lt.s32.totalorder %v254_v46, 3 }
 0x141   :  { %v513_v17 = vsub.s32 %v509_v52, %v512_v4  ;;  %v427_v49 = vcvt.s32.f32 %v420_v3  ;;  %v257_v58 = vshrl.u32 %v768_v42, %v256_v45  ;;  %vm276_vm9 = vcmp.lt.s32.totalorder %v254_v46, 4 }
 0x142   :  { %v278_v37 = vsel %vm276_vm9, %v266_v40, 2102212464  ;;  %v281_v51 = vsel %vm273_vm5, %v260_v11, %v263_v13  ;;  %v282_v23 = vsel %vm276_vm9, %v269_v19, 920167782  ;;  %v285_v36 = vsel %vm273_vm5, %v263_v13, %v266_v40 }
 0x143   :  { %v515_v21 = vsub.s32 0, %v513_v17  ;;  %v208_v38 = vsel %vm601_vm6, 0, %v600_v27  ;;  %v283_v29 = vsel %vm275_vm8, %v266_v40, %v282_v23  ;;  %v286_v31 = vsel %vm276_vm9, %v272_v44, 1326507024 }
 0x144   :  { %v428_v34 = vmul.f32 %v427_v49, %v425_v47  ;;  %v284_v33 = vsel %vm274_vm7, %v281_v51, %v283_v29  ;;  %v287_v41 = vsel %vm275_vm8, %v269_v19, %v286_v31  ;;  %v289_v43 = vshll.u32 %v249_v20, 8 }
 0x145   :  { %v611_v28 = vmin.u32 %v515_v21, %v513_v17  ;;  %v277_v42 = vsel %vm273_vm5, %v257_v58, %v260_v11  ;;  %v279_v45 = vsel %vm275_vm8, %v263_v13, %v278_v37  ;;  %v288_v48 = vsel %vm274_vm7, %v285_v36, %v287_v41 }
 0x146   :  { %v1029_v50 = vmul.u32.u64.low %v289_v43, %v288_v48  ;;  %v1030_v52 = vmul.u32.u64.high %v289_v43, %v288_v48, %v1029_v50  ;;  %v1032_v53 = vmul.u32.u64.low %v289_v43, %v284_v33  ;;  %v1033_v32 = vmul.u32.u64.high %v289_v43, %v284_v33, %v1032_v53 }
 0x147   :  { %v517_v39 = vclz %v611_v28  ;;  %v213_v54 = vsub.s32 4294967266, %v208_v38  ;;  %v429_v57 = vxor.u32 2147483648, %v428_v34  ;;  %v280_v59 = vsel %vm274_vm7, %v277_v42, %v279_v45 }
 0x148   :  { %vm347_vm11 = vcmp.lt.s32.totalorder %v828_v6, 0  ;;  %v505_v60 = vadd.s32 %v984_v18, %v992_v24  ;;  %vm298_vm12 = vc.u32 %v1030_v52, %v1032_v53  ;;  %v299_v0 = vadd.s32 1, %v1033_v32 }
 0x149   :  { %v612_v56 = vadd.s32 4294967294, %v517_v39  ;;  %v214_v25 = vadd.s32 127, %v213_v54  ;;  %v430_v22 = vsel %vm347_vm11, %v429_v57, %v428_v34  ;;  %v209_v1 = vsub.s32 32, %v208_v38 }
 0x14a   :  { %v296_v46 = vmul.u32 %v289_v43, %v280_v59  ;;  %v300_v9 = vsel %vm298_vm12, %v299_v0, %v1033_v32  ;;  %vm1048_vm13 = vcmp.le.f32.partialorder %v345_v10, 0.7853982  ;;  %v193_v11 = vadd.s32 %v919_v7, %v927_v15 }
 0x14b   :  { %vm613_vm10 = vcmp.lt.s32.totalorder %v612_v56, 0  ;;  %v215_v13 = vshll.u32 %v214_v25, 23  ;;  %v431_v44 = vsub.s32 4, %v931_v16  ;;  %v210_v10 = vshll.u32 %v974_v5, %v208_v38 }
 0x14c   :  { %v520_v61 = vsel %vm613_vm10, 0, %v612_v56  ;;  %v301_v24 = vadd.s32 %v300_v9, %v296_v46  ;;  %v211_v47 = vshrl.u32 %v193_v11, %v209_v1  ;;  %v535_v28 = vsub.s32 4, %v1011_v62 }
 0x14d   :  { %v521_v27 = vsub.s32 32, %v520_v61  ;;  %v525_v63 = vsub.s32 4294967266, %v520_v61  ;;  %v522_v2 = vshll.u32 %v513_v17, %v520_v61  ;;  %v433_v17 = vsel %vm1048_vm13, %v828_v6, %v430_v22 }
 0x14e   :  { %v302_v20 = vadd.s32 536870912, %v301_v24  ;;  %676 = vcosq.f32 %v433_v17  ;;  %v216_v58 = vor.u32 4788187, %v215_v13  ;;  %v432_v51 = vsel %vm347_vm11, %v431_v44, %v931_v16 }
 0x14f   :  { %v523_v3 = vshrl.u32 %v505_v60, %v521_v27  ;;  %v526_v4 = vadd.s32 127, %v525_v63  ;;  %678 = vsinq.f32 %v433_v17  ;;  %v212_v23 = vor.u32 %v211_v47, %v210_v10 }
 0x150   :  { %v1059_v21 = vshrl.u32 %v302_v20, 30  ;;  %v217_v31 = vand.u32 2147483647, %v216_v58  ;;  %vm451_vm14 = vcmp.lt.s32.totalorder %v834_v12, 0  ;;  %v434_v34 = vsel %vm1048_vm13, 0, %v432_v51 }
 0x151   :  { %v524_v40 = vor.u32 %v523_v3, %v522_v2  ;;  %v527_v19 = vshll.u32 %v526_v4, 23  ;;  %v219_v33 = vcvt.s32.f32 %v212_v23  ;;  %vm1071_vm15 = vcmp.le.f32.partialorder %v449_v26, 0.7853982 }
 0x152   :  { %v304_v15 = vshll.u32 %v1059_v21, 30  ;;  %v536_v43 = vsel %vm451_vm14, %v535_v28, %v1011_v62  ;;  %v438_v48 = vadd.s32 3, %v434_v34  ;;  %vm139_vm1 = vcmp.lt.s32.totalorder %v830_v8, 0 }
 0x153   :  { %v528_v49 = vor.u32 4788187, %v527_v19  ;;  %v531_v7 = vcvt.s32.f32 %v524_v40  ;;  %v220_v45 = vmul.f32 %v219_v33, %v217_v31  ;;  %v538_v32 = vsel %vm1071_vm15, 0, %v536_v43 }
 0x154   :  { %v305_v29 = vsub.s32 %v301_v24, %v304_v15  ;;  %v439_v59 = vand.u32 3, %v438_v48  ;;  %v542_v60 = vadd.s32 3, %v538_v32  ;;  %v297_v27 = vadd.s32 %v1032_v53, %v1030_v52 }
 0x155   :  { %v529_v37 = vand.u32 2147483647, %v528_v49  ;;  %v221_v57 = vxor.u32 2147483648, %v220_v45  ;;  %vm1088_vm4 = vcmp.le.f32.partialorder %v137_v14, 0.7853982  ;;  %v223_v19 = vsub.s32 4, %v956_v55 }
 0x156   :  { %v307_v38 = vsub.s32 0, %v305_v29  ;;  %vm441_vm2 = vcmp.eq.s32.totalorder %v439_v59, 0  ;;  %v543_v1 = vand.u32 3, %v542_v60  ;;  %vm444_vm3 = vcmp.eq.s32.totalorder %v439_v59, 2 }
 0x157   :  { %v532_v36 = vmul.f32 %v531_v7, %v529_v37  ;;  %v222_v22 = vsel %vm139_vm1, %v221_v57, %v220_v45  ;;  %vm440_vm5 = vcmp.lt.s32.totalorder %v439_v59, 2  ;;  %vm437_vm8 = vweird.f32 %v828_v6 }
 0x158   :  { %v603_v42 = vmin.u32 %v307_v38, %v305_v29  ;;  %v677_v26 = vpop.eup %676  ;;  %v225_v24 = vsel %vm1088_vm4, %v830_v8, %v222_v22  ;;  %vm548_vm6 = vcmp.eq.s32.totalorder %v543_v1, 2  ;;  %vm545_vm7 = vcmp.eq.s32.totalorder %v543_v1, 0 }
 0x159   :  { %v533_v5 = vxor.u32 2147483648, %v532_v36  ;;  %v679_v54 = vpop.eup %678  ;;  %v445_v25 = vxor.u32 2147483648, %v677_v26  ;;  %vm544_vm9 = vcmp.lt.s32.totalorder %v543_v1, 2  ;;  %vm541_vm10 = vweird.f32 %v834_v12 }
 0x15a   :  { %v309_v50 = vclz %v603_v42  ;;  %v442_v61 = vxor.u32 2147483648, %v679_v54  ;;  %v327_v51 = vsub.s32 4, %v1059_v21  ;;  %vm243_vm11 = vcmp.lt.s32.totalorder %v844_v30, 0 }
 0x15b   :  { %v534_v16 = vsel %vm451_vm14, %v533_v5, %v532_v36  ;;  %v446_v52 = vsel %vm444_vm3, %v445_v25, %v679_v54  ;;  %v224_v36 = vsel %vm139_vm1, %v223_v19, %v956_v55  ;;  %vm242_vm12 = vcmp.le.f32.partialorder %v241_v35, 0.7853982 }
 0x15c   :  { %v537_v39 = vsel %vm1071_vm15, %v834_v12, %v534_v16  ;;  %v604_v56 = vadd.s32 4294967294, %v309_v50  ;;  %v443_v18 = vsel %vm441_vm2, %v677_v26, %v442_v61  ;;  %v328_v12 = vsel %vm243_vm11, %v327_v51, %v1059_v21 }
 0x15d   :  { %680 = vcosq.f32 %v537_v39  ;;  %v447_v14 = vsel %vm440_vm5, %v443_v18, %v446_v52  ;;  %v330_v55 = vsel %vm242_vm12, 0, %v328_v12  ;;  %vm229_vm3 = vweird.f32 %v830_v8 }
 0x15e   :  { %682 = vsinq.f32 %v537_v39  ;;  %vm605_vm0 = vcmp.lt.s32.totalorder %v604_v56, 0  ;;  %v448_v37 = vsel %vm437_vm8, nan, %v447_v14  ;;  %v334_v33 = vadd.s32 3, %v330_v55 }
 0x15f   :  { %v312_v62 = vsel %vm605_vm0, 0, %v604_v56  ;;  %684 = vcosq.f32 %v225_v24 }
 0x160   :  { %v313_v63 = vsub.s32 32, %v312_v62  ;;  %v317_v0 = vsub.s32 4294967266, %v312_v62  ;;  %v314_v46 = vshll.u32 %v305_v29, %v312_v62  ;;  %686 = vsinq.f32 %v225_v24 }
 0x161   :  { %v226_v29 = vsel %vm1088_vm4, 0, %v224_v36  ;;  %v335_v39 = vand.u32 3, %v334_v33  ;;  %vm333_vm4 = vweird.f32 %v844_v30 }
 0x162   :  { %v315_v2 = vshrl.u32 %v297_v27, %v313_v63  ;;  %v318_v3 = vadd.s32 127, %v317_v0  ;;  %v230_v38 = vadd.s32 3, %v226_v29 }
 0x163   :  { %vm340_vm0 = vcmp.eq.s32.totalorder %v335_v39, 2  ;;  %vm337_vm1 = vcmp.eq.s32.totalorder %v335_v39, 0  ;;  %vm336_vm2 = vcmp.lt.s32.totalorder %v335_v39, 2 }
 0x164   :  { %v316_v11 = vor.u32 %v315_v2, %v314_v46  ;;  %v319_v13 = vshll.u32 %v318_v3, 23  ;;  %v231_v41 = vand.u32 3, %v230_v38 }
 0x166   :  { %v320_v20 = vor.u32 4788187, %v319_v13  ;;  %v323_v10 = vcvt.s32.f32 %v316_v11  ;;  %vm233_vm13 = vcmp.eq.s32.totalorder %v231_v41, 0  ;;  %vm236_vm14 = vcmp.eq.s32.totalorder %v231_v41, 2 }
 0x167   :  { %v681_v4 = vpop.eup %680  ;;  %vm232_vm15 = vcmp.lt.s32.totalorder %v231_v41, 2 }
 0x168   :  { %v683_v53 = vpop.eup %682  ;;  %v549_v40 = vxor.u32 2147483648, %v681_v4  ;;  %v321_v49 = vand.u32 2147483647, %v320_v20 }
 0x169   :  { %v546_v17 = vxor.u32 2147483648, %v683_v53  ;;  %v685_v5 = vpop.eup %684 }
 0x16a   :  { %v550_v44 = vsel %vm548_vm6, %v549_v40, %v683_v53  ;;  %v324_v15 = vmul.f32 %v323_v10, %v321_v49  ;;  %v687_v34 = vpop.eup %686  ;;  %v237_v43 = vxor.u32 2147483648, %v685_v5 }
 0x16b   :  { %v547_v47 = vsel %vm545_vm7, %v681_v4, %v546_v17  ;;  %v234_v16 = vxor.u32 2147483648, %v687_v34 }
 0x16c   :  { %v551_v58 = vsel %vm544_vm9, %v547_v47, %v550_v44  ;;  %v325_v28 = vxor.u32 2147483648, %v324_v15  ;;  %v238_v42 = vsel %vm236_vm14, %v237_v43, %v687_v34 }
 0x16d   :  { %v552_v7 = vsel %vm541_vm10, nan, %v551_v58  ;;  %v235_v21 = vsel %vm233_vm13, %v685_v5, %v234_v16 }
 0x16e   :  { %v630_v23 = vpack.c.bf16 %v552_v7, %v448_v37  ;;  %v326_v6 = vsel %vm243_vm11, %v325_v28, %v324_v15  ;;  %v239_v32 = vsel %vm232_vm15, %v235_v21, %v238_v42 }
 0x16f   :  { %v329_v31 = vsel %vm242_vm12, %v844_v30, %v326_v6  ;;  %v240_v57 = vsel %vm229_vm3, nan, %v239_v32 }
 0x170   :  { %632 = vst [vmem:[#allocation7 + $0x8] sm:$0xff] %v630_v23   ;;  %688 = vcosq.f32 %v329_v31 }
 0x171   :  { %690 = vsinq.f32 %v329_v31 }
 0x17a   :  { %v689_v35 = vpop.eup %688 }
 0x17b   :  { %v691_v45 = vpop.eup %690  ;;  %v341_v48 = vxor.u32 2147483648, %v689_v35 }
 0x17c   :  { %v338_v50 = vxor.u32 2147483648, %v691_v45 }
 0x17d   :  { %v342_v26 = vsel %vm340_vm0, %v341_v48, %v691_v45 }
 0x17e   :  { %v339_v54 = vsel %vm337_vm1, %v689_v35, %v338_v50 }
 0x17f   :  { %v343_v56 = vsel %vm336_vm2, %v339_v54, %v342_v26 }
 0x180   :  { %v344_v59 = vsel %vm333_vm4, nan, %v343_v56 }
 0x181   :  { %v625_v60 = vpack.c.bf16 %v344_v59, %v240_v57 }
 0x183   :  { %626 = vst [vmem:[#allocation7] sm:$0xff] %v625_v60  }
 0x184   :  { %747 = shalt.err (!%p744_p6)
}
 0x185   :  { %s748_s15 = scalar_lea.hbm %s1129_s3, 256 }
 0x186   :  { %p749_p7 = scmp.ne.s32.totalorder %s1129_s3, %s748_s15  ;;  %p752_p8 = scmp.lt.u32.totalorder %s748_s15, %s1129_s3 }
 0x188   :  { %p754_p9 = pnand %p752_p8, %p749_p7 }
 0x18a   :  { %757 = shalt.err (!%p754_p9)
}
 0x18b   :  { %584 = dma.vmem_to_hbm [thread:$0]  %s579_s2, 256, %s1129_s3, [#allocation4], %s765_s22, %s765_s22, %s766_s23  }
 0x18c   :  { %762 = dma.done.wait [#allocation4], 256  }
 0x18d   :  { %763 = vsyncadd [#allocation4], 4294967040 }
 0x18e   :  { %588 = vsyncpa [#allocation3], 1 }
 0x18f   :  { %589 = vsyncpa [#allocation6], 1 }
 0x190   :  { %590 = vsyncpa [#allocation4], 1 }

</bundles_post_ra>
